<compile_context>
chip_gen: v5e
topology: v5e:2x2
jax: 0.10.0
libtpu: 0.0.40
codegen_flags: <defaults>
</compile_context>

<pallas_src>
import functools

import numpy as np
import jax
import jax.numpy as jnp
from jax import lax
from jax.experimental import pallas as pl
from jax.experimental.pallas import tpu as pltpu


def _round_up(x, m):
    return (x + m - 1) // m * m


def _pick_tile(dim, candidates):
    for t in candidates:
        if dim % t == 0:
            return t
    return dim


# ---------------------------------------------------------------------------
# Fused conv (im2col matmul) kernel
#   a (tm, K) bf16 @ w (K, tn) bf16 -> f32 accumulate, with:
#     optional pre-add  : a   = a + add                            (fused residual/interp add)
#     optional prologue : a   = relu(a * pro_scale + pro_shift)    (folded BN+ReLU)
#     optional epilogue : acc = acc * epi_scale + epi_shift [, relu]
#     optional residual : acc = acc + res                          (residual add)
#              or       : acc = (1 + sigmoid(acc)) * res           (attention combine)
# ---------------------------------------------------------------------------
def _conv_mm_kernel(*refs, has_add, has_pro, has_epi, epi_relu, has_res, combine):
    o_ref = refs[-1]
    it = iter(refs[:-1])
    a_ref = next(it)
    w_ref = next(it)
    a = a_ref[...]
    if has_add:
        b_ref = next(it)
        a = a.astype(jnp.float32) + b_ref[...].astype(jnp.float32)
    if has_pro:
        ps = next(it)[...]
        pf = next(it)[...]
        a = jnp.maximum(a.astype(jnp.float32) * ps + pf, 0.0)
    if has_add or has_pro:
        a = a.astype(w_ref.dtype)
    acc = jnp.dot(a, w_ref[...], preferred_element_type=jnp.float32)
    if has_epi:
        es = next(it)[...]
        ef = next(it)[...]
        acc = acc * es + ef
    if epi_relu:
        acc = jnp.maximum(acc, 0.0)
    if has_res:
        r = next(it)[...].astype(jnp.float32)
        if combine:
            acc = (1.0 + jax.nn.sigmoid(acc)) * r
        else:
            acc = acc + r
    o_ref[...] = acc.astype(o_ref.dtype)


def conv_mm(a, w, *, add=None, pro=None, epi=None, epi_relu=False, res=None,
            combine=False, out_dtype=jnp.bfloat16):
    """Fused (M, K) @ (K, N) matmul with optional pre-add / BN+ReLU prologue /
    BN(+ReLU) epilogue / residual-add or attention-combine epilogue."""
    M, K = a.shape
    Kw, N = w.shape
    assert K == Kw, (K, Kw)
    if K % 8 != 0:                        # only the 27-wide stem conv hits this
        kp = _round_up(K, 8)
        a = jnp.pad(a, ((0, 0), (0, kp - K)))
        w = jnp.pad(w, ((0, kp - K), (0, 0)))
        if add is not None:
            add = jnp.pad(add, ((0, 0), (0, kp - K)))
        if pro is not None:
            pro = tuple(jnp.pad(t, ((0, 0), (0, kp - K))) for t in pro)
        K = kp
    tm = _pick_tile(M, (512, 256, 128, 64, 32, 16, 8))
    tn = _pick_tile(N, (256, 128))

    in_specs = [pl.BlockSpec((tm, K), lambda i, j: (i, 0)),
                pl.BlockSpec((K, tn), lambda i, j: (0, j))]
    args = [a, w]
    if add is not None:
        in_specs.append(pl.BlockSpec((tm, K), lambda i, j: (i, 0)))
        args.append(add)
    if pro is not None:
        in_specs += [pl.BlockSpec((1, K), lambda i, j: (0, 0)),
                     pl.BlockSpec((1, K), lambda i, j: (0, 0))]
        args += [pro[0], pro[1]]
    if epi is not None:
        in_specs += [pl.BlockSpec((1, tn), lambda i, j: (0, j)),
                     pl.BlockSpec((1, tn), lambda i, j: (0, j))]
        args += [epi[0], epi[1]]
    if res is not None:
        in_specs.append(pl.BlockSpec((tm, tn), lambda i, j: (i, j)))
        args.append(res)

    kernel = functools.partial(
        _conv_mm_kernel, has_add=add is not None, has_pro=pro is not None,
        has_epi=epi is not None, epi_relu=epi_relu, has_res=res is not None,
        combine=combine)

    return pl.pallas_call(
        kernel,
        out_shape=jax.ShapeDtypeStruct((M, N), out_dtype),
        grid_spec=pltpu.PrefetchScalarGridSpec(
            num_scalar_prefetch=0,
            grid=(M // tm, N // tn),
            in_specs=in_specs,
            out_specs=pl.BlockSpec((tm, tn), lambda i, j: (i, j)),
        ),
        compiler_params=pltpu.CompilerParams(
            dimension_semantics=("parallel", "parallel")),
    )(*args)


# ---------------------------------------------------------------------------
# Tiled elementwise kernels (the only standalone ones left)
# ---------------------------------------------------------------------------
def _add3_kernel(a_ref, b_ref, c_ref, o_ref):
    o_ref[...] = (a_ref[...].astype(jnp.float32)
                  + b_ref[...].astype(jnp.float32)
                  + c_ref[...].astype(jnp.float32)).astype(o_ref.dtype)


@jax.jit
def pallas_add3(a, b, c):
    """Elementwise a + b + c over NHWC tensors (bf16 out), row-tiled."""
    shp = a.shape
    ch = shp[-1]
    a2 = a.reshape(-1, ch)
    b2 = b.reshape(-1, ch)
    c2 = c.reshape(-1, ch)
    M = a2.shape[0]
    tm = _pick_tile(M, (512, 256, 128, 64, 32, 16, 8))
    out = pl.pallas_call(
        _add3_kernel,
        out_shape=jax.ShapeDtypeStruct((M, ch), jnp.bfloat16),
        grid_spec=pltpu.PrefetchScalarGridSpec(
            num_scalar_prefetch=0,
            grid=(M // tm,),
            in_specs=[pl.BlockSpec((tm, ch), lambda i: (i, 0)),
                      pl.BlockSpec((tm, ch), lambda i: (i, 0)),
                      pl.BlockSpec((tm, ch), lambda i: (i, 0))],
            out_specs=pl.BlockSpec((tm, ch), lambda i: (i, 0)),
        ),
        compiler_params=pltpu.CompilerParams(dimension_semantics=("parallel",)),
    )(a2, b2, c2)
    return out.reshape(shp)


def _bn_relu_kernel(x_ref, s_ref, f_ref, o_ref):
    o_ref[...] = jnp.maximum(
        x_ref[...].astype(jnp.float32) * s_ref[...] + f_ref[...], 0.0
    ).astype(o_ref.dtype)


def bn_relu(x, scale, shift, out_dtype=jnp.float32):
    """Standalone folded-BN + ReLU (only used by the final mpool2 head)."""
    # TODO(synk): BatchNorm uses eval-mode running statistics folded to a
    # per-channel affine; train-mode batch statistics are not reproduced.
    n, h, w, c = x.shape
    x2 = x.reshape(n * h * w, c)
    M = x2.shape[0]
    tm = _pick_tile(M, (512, 256, 128, 64, 32, 16, 8))
    out = pl.pallas_call(
        _bn_relu_kernel,
        out_shape=jax.ShapeDtypeStruct((M, c), out_dtype),
        grid_spec=pltpu.PrefetchScalarGridSpec(
            num_scalar_prefetch=0,
            grid=(M // tm,),
            in_specs=[pl.BlockSpec((tm, c), lambda i: (i, 0)),
                      pl.BlockSpec((1, c), lambda i: (0, 0)),
                      pl.BlockSpec((1, c), lambda i: (0, 0))],
            out_specs=pl.BlockSpec((tm, c), lambda i: (i, 0)),
        ),
        compiler_params=pltpu.CompilerParams(dimension_semantics=("parallel",)),
    )(x2, scale, shift)
    return out.reshape(n, h, w, c)


# ---------------------------------------------------------------------------
# Glue ops (plain JAX, fused by XLA inside the jitted sub-blocks)
# ---------------------------------------------------------------------------
def _im2col(x, kh, kw, stride, padding):
    """NHWC -> (N*OH*OW, KH*KW*C) bf16 patches via static slices + concat."""
    # TODO(synk): 3x3 patch extraction is still materialized by XLA rather than
    # folded into the matmul reduction axis via BlockSpec offsets.
    n, h, w, c = x.shape
    if padding:
        x = jnp.pad(x, ((0, 0), (padding, padding), (padding, padding), (0, 0)))
    hp, wp = x.shape[1], x.shape[2]
    oh = (hp - kh) // stride + 1
    ow = (wp - kw) // stride + 1
    cols = []
    for iy in range(kh):
        for ix in range(kw):
            cols.append(x[:, iy:iy + (oh - 1) * stride + 1:stride,
                          ix:ix + (ow - 1) * stride + 1:stride, :])
    patches = jnp.concatenate(cols, axis=-1)
    return patches.reshape(n * oh * ow, kh * kw * c), oh, ow


@jax.jit
def maxpool_3x3_s2_p1(x):
    # TODO(synk): max-pool kept as lax.reduce_window glue rather than a Pallas kernel.
    return lax.reduce_window(x, jnp.array(-jnp.inf, x.dtype), lax.max,
                             window_dimensions=(1, 3, 3, 1),
                             window_strides=(1, 2, 2, 1),
                             padding=((0, 0), (1, 1), (1, 1), (0, 0)))


def _interp_matrix(in_size, out_size):
    s = np.linspace(0.0, in_size - 1.0, out_size)
    i0 = np.floor(s).astype(np.int64)
    i1 = np.minimum(i0 + 1, in_size - 1)
    frac = (s - i0).astype(np.float32)
    r = np.zeros((out_size, in_size), np.float32)
    r[np.arange(out_size), i0] += 1.0 - frac
    r[np.arange(out_size), i1] += frac
    return jnp.asarray(r)


@functools.partial(jax.jit, static_argnames=("out_h", "out_w"))
def upsample_bilinear_align_corners(x, *, out_h, out_w):
    """nn.UpsamplingBilinear2d(size=...) == bilinear resize, align_corners=True.
    Gather-free: separable interpolation matrices (trace-time constants)."""
    rh = _interp_matrix(x.shape[1], out_h)
    rw = _interp_matrix(x.shape[2], out_w)
    y = jnp.einsum("Hh,nhwc->nHwc", rh, x.astype(jnp.float32))
    y = jnp.einsum("Ww,nHwc->nHWc", rw, y)
    return y.astype(jnp.bfloat16)


# ---------------------------------------------------------------------------
# Deterministic parameter construction (weights pre-reshaped / pre-cast)
# ---------------------------------------------------------------------------
class ParamGen:
    def __init__(self, seed=0):
        self._key = jax.random.PRNGKey(seed)
        self._n = 0

    def _next(self):
        self._n += 1
        return jax.random.fold_in(self._key, self._n)

    def conv(self, kh, kw, cin, cout):
        """Conv weight pre-reshaped to (KH*KW*Cin, Cout) and pre-cast to bf16."""
        std = 0.5 * (2.0 / (kh * kw * cin)) ** 0.5
        w = std * jax.random.normal(self._next(), (kh, kw, cin, cout), jnp.float32)
        return w.reshape(kh * kw * cin, cout).astype(jnp.bfloat16)

    def bn(self, c):
        """Eval-mode BatchNorm folded to (scale, shift), each shaped (1, C) f32."""
        k = self._next()
        gamma = 1.0 + 0.1 * jax.random.normal(jax.random.fold_in(k, 0), (c,), jnp.float32)
        beta = 0.05 * jax.random.normal(jax.random.fold_in(k, 1), (c,), jnp.float32)
        mean = 0.05 * jax.random.normal(jax.random.fold_in(k, 2), (c,), jnp.float32)
        var = 1.0 + 0.1 * jnp.abs(jax.random.normal(jax.random.fold_in(k, 3), (c,), jnp.float32))
        scale = gamma / jnp.sqrt(var + 1e-5)
        shift = beta - mean * scale
        return scale.reshape(1, c), shift.reshape(1, c)

    def linear(self, cin, cout):
        k = self._next()
        w = (1.0 / cin ** 0.5) * jax.random.normal(jax.random.fold_in(k, 0), (cin, cout), jnp.float32)
        b = (1.0 / cin ** 0.5) * jax.random.normal(jax.random.fold_in(k, 1), (cout,), jnp.float32)
        return w, b


# ---------------------------------------------------------------------------
# Building blocks (matching the PyTorch reference modules)
# ---------------------------------------------------------------------------
def make_residual_block(pg, cin, cout, stride=1):
    mid = cout // 4
    p = {"bn1": pg.bn(cin), "w1": pg.conv(1, 1, cin, mid),
         "bn2": pg.bn(mid), "w2": pg.conv(3, 3, mid, mid),
         "bn3": pg.bn(mid), "w3": pg.conv(1, 1, mid, cout),
         "stride": stride}
    if (cin != cout) or (stride != 1):
        p["w4"] = pg.conv(1, 1, cin, cout)
    return p


@functools.partial(jax.jit, static_argnames=("stride",))
def _residual_block_impl(x, bn1, w1, bn2, w2, bn3, w3, w4, *, stride):
    # Pre-activation bottleneck, 3-4 fused pallas_calls total:
    #   conv1: 1x1, [bn1+relu] prologue + [bn2+relu] epilogue
    #   conv2: 3x3 (stride), [bn3+relu] epilogue
    #   conv3: 1x1, residual-add epilogue
    #   conv4: 1x1 shortcut (if present), [bn1+relu] prologue
    n, h, w_, cin = x.shape
    x2 = x.reshape(n * h * w_, cin)
    mid = conv_mm(x2, w1, pro=bn1, epi=bn2, epi_relu=True)
    mid_nhwc = mid.reshape(n, h, w_, mid.shape[-1])
    a2, oh, ow = _im2col(mid_nhwc, 3, 3, stride, 1)
    out = conv_mm(a2, w2, epi=bn3, epi_relu=True)
    if w4 is not None:
        xs = x if stride == 1 else x[:, ::stride, ::stride, :]
        residual = conv_mm(xs.reshape(n * oh * ow, cin), w4, pro=bn1)
    else:
        residual = x2
    out = conv_mm(out, w3, res=residual)
    return out.reshape(n, oh, ow, w3.shape[-1])


def residual_block(p, x):
    return _residual_block_impl(x, p["bn1"], p["w1"], p["bn2"], p["w2"],
                                p["bn3"], p["w3"], p.get("w4"),
                                stride=p["stride"])


def make_mask_blocks(pg, c):
    # BN, ReLU, Conv1x1, BN, ReLU, Conv1x1, Sigmoid -> fused into 2 conv calls.
    return {"bn1": pg.bn(c), "w1": pg.conv(1, 1, c, c),
            "bn2": pg.bn(c), "w2": pg.conv(1, 1, c, c)}


@functools.partial(jax.jit, static_argnames=("add_trunk",))
def _mask_combine_impl(x, trunk, bn1, w1, bn2, w2, *, add_trunk):
    # softmax2_blocks + (1 + sigmoid) * trunk, optionally with the preceding
    # "interp + trunk" add fused into the first conv's prologue.
    n, h, w_, c = x.shape
    M = n * h * w_
    x2 = x.reshape(M, c)
    t2 = trunk.reshape(M, c)
    hid = conv_mm(x2, w1, add=t2 if add_trunk else None,
                  pro=bn1, epi=bn2, epi_relu=True)
    out = conv_mm(hid, w2, res=t2, combine=True)      # (1 + sigmoid(logits)) * trunk
    return out.reshape(n, h, w_, c)


def mask_and_combine(p, x, trunk, *, add_trunk):
    return _mask_combine_impl(x, trunk, p["bn1"], p["w1"], p["bn2"], p["w2"],
                              add_trunk=add_trunk)


# ---------------------------------------------------------------------------
# Attention modules
# ---------------------------------------------------------------------------
def make_attn_stage1(pg, cin, cout):
    return {"first": make_residual_block(pg, cin, cout),
            "trunk": [make_residual_block(pg, cin, cout), make_residual_block(pg, cin, cout)],
            "down1": make_residual_block(pg, cin, cout),
            "skip1": make_residual_block(pg, cin, cout),
            "middle": [make_residual_block(pg, cin, cout), make_residual_block(pg, cin, cout)],
            "up1": make_residual_block(pg, cin, cout),
            "mask": make_mask_blocks(pg, cout),
            "last": make_residual_block(pg, cin, cout)}


def attn_stage1(p, x, size1, size2):
    x = residual_block(p["first"], x)
    out_trunk = x
    for rp in p["trunk"]:
        out_trunk = residual_block(rp, out_trunk)
    out_mpool1 = maxpool_3x3_s2_p1(x)
    out_down1 = residual_block(p["down1"], out_mpool1)
    out_skip1 = residual_block(p["skip1"], out_down1)
    out_mpool2 = maxpool_3x3_s2_p1(out_down1)
    out_mid = out_mpool2
    for rp in p["middle"]:
        out_mid = residual_block(rp, out_mid)
    up1 = upsample_bilinear_align_corners(out_mid, out_h=size2[0], out_w=size2[1])
    out = pallas_add3(up1, out_down1, out_skip1)
    out_up1 = residual_block(p["up1"], out)
    up2 = upsample_bilinear_align_corners(out_up1, out_h=size1[0], out_w=size1[1])
    # up2 + out_trunk add is fused into the mask's first conv prologue.
    out = mask_and_combine(p["mask"], up2, out_trunk, add_trunk=True)
    return residual_block(p["last"], out)


def make_attn_stage2(pg, cin, cout):
    return {"first": make_residual_block(pg, cin, cout),
            "trunk": [make_residual_block(pg, cin, cout), make_residual_block(pg, cin, cout)],
            "middle": [make_residual_block(pg, cin, cout), make_residual_block(pg, cin, cout)],
            "mask": make_mask_blocks(pg, cout),
            "last": make_residual_block(pg, cin, cout)}


def attn_stage2(p, x, size):
    x = residual_block(p["first"], x)
    out_trunk = x
    for rp in p["trunk"]:
        out_trunk = residual_block(rp, out_trunk)
    out_mpool1 = maxpool_3x3_s2_p1(x)
    out_mid = out_mpool1
    for rp in p["middle"]:
        out_mid = residual_block(rp, out_mid)
    up = upsample_bilinear_align_corners(out_mid, out_h=size[0], out_w=size[1])
    out = mask_and_combine(p["mask"], up, out_trunk, add_trunk=True)
    return residual_block(p["last"], out)


def make_attn_stage3(pg, cin, cout):
    return {"first": make_residual_block(pg, cin, cout),
            "trunk": [make_residual_block(pg, cin, cout), make_residual_block(pg, cin, cout)],
            "middle": [make_residual_block(pg, cin, cout), make_residual_block(pg, cin, cout)],
            "mask": make_mask_blocks(pg, cout),
            "last": make_residual_block(pg, cin, cout)}


def attn_stage3(p, x):
    x = residual_block(p["first"], x)
    out_trunk = x
    for rp in p["trunk"]:
        out_trunk = residual_block(rp, out_trunk)
    out_mid = x
    for rp in p["middle"]:
        out_mid = residual_block(rp, out_mid)
    out = mask_and_combine(p["mask"], out_mid, out_trunk, add_trunk=False)
    return residual_block(p["last"], out)


# ---------------------------------------------------------------------------
# Full model
# ---------------------------------------------------------------------------
def make_model_params(seed=0):
    pg = ParamGen(seed)
    p = {}
    p["conv1_w"] = pg.conv(3, 3, 3, 32)
    p["conv1_bn"] = pg.bn(32)
    p["rb1"] = make_residual_block(pg, 32, 128)
    p["attn1"] = make_attn_stage1(pg, 128, 128)
    p["rb2"] = make_residual_block(pg, 128, 256, stride=2)
    p["attn2"] = make_attn_stage2(pg, 256, 256)
    p["attn2_2"] = make_attn_stage2(pg, 256, 256)
    p["rb3"] = make_residual_block(pg, 256, 512, stride=2)
    p["attn3"] = make_attn_stage3(pg, 512, 512)
    p["attn3_2"] = make_attn_stage3(pg, 512, 512)
    p["attn3_3"] = make_attn_stage3(pg, 512, 512)
    p["rb4"] = make_residual_block(pg, 512, 1024)
    p["rb5"] = make_residual_block(pg, 1024, 1024)
    p["rb6"] = make_residual_block(pg, 1024, 1024)
    p["mpool2_bn"] = pg.bn(1024)
    p["fc"] = pg.linear(1024, 10)
    return p


@jax.jit
def _stem_impl(x_nchw, w, bn):
    # Conv2d(3, 32, 3, s1, p1, bias=False) + BN + ReLU, BN+ReLU fused into the
    # conv epilogue.  NCHW -> NHWC once at model entry, activations kept bf16.
    x = jnp.transpose(x_nchw.astype(jnp.float32), (0, 2, 3, 1)).astype(jnp.bfloat16)
    n = x.shape[0]
    a, oh, ow = _im2col(x, 3, 3, 1, 1)
    out = conv_mm(a, w, epi=bn, epi_relu=True)
    return out.reshape(n, oh, ow, out.shape[-1])


@jax.jit
def _head_impl(x, bn, fc_w, fc_b):
    # mpool2: BN + ReLU (Pallas) + AvgPool2d(8) on 8x8, then the tiny FC as a
    # plain jnp.dot (M=2, N=10 is not worth an MXU kernel launch).
    out = bn_relu(x, bn[0], bn[1], out_dtype=jnp.float32)
    out = jnp.mean(out, axis=(1, 2))
    return jnp.dot(out, fc_w) + fc_b[None, :]


def model_forward(p, x_nchw):
    out = _stem_impl(x_nchw, p["conv1_w"], p["conv1_bn"])
    out = residual_block(p["rb1"], out)
    out = attn_stage1(p["attn1"], out, size1=(32, 32), size2=(16, 16))
    out = residual_block(p["rb2"], out)
    out = attn_stage2(p["attn2"], out, size=(16, 16))
    out = attn_stage2(p["attn2_2"], out, size=(16, 16))
    out = residual_block(p["rb3"], out)
    out = attn_stage3(p["attn3"], out)
    out = attn_stage3(p["attn3_2"], out)
    out = attn_stage3(p["attn3_3"], out)
    out = residual_block(p["rb4"], out)
    out = residual_block(p["rb5"], out)
    out = residual_block(p["rb6"], out)
    return _head_impl(out, p["mpool2_bn"], p["fc"][0], p["fc"][1])


if __name__ == "__main__":
    key = jax.random.PRNGKey(0)
    x = jax.random.normal(key, (2, 3, 32, 32), jnp.float32)  # CIFAR-sized NCHW input
    params = make_model_params(seed=0)
    logits = model_forward(params, x)
    logits = jax.block_until_ready(logits)
    assert logits.shape == (2, 10), logits.shape
    print("KERNEL_OK")
</pallas_src>

<mosaic_0001>
module attributes {stable_mosaic.version = 11 : i64} {
  func.func @_conv_mm_kernel(%arg0: i32, %arg1: i32, %arg2: memref<512x32xbf16, #tpu.memory_space<vmem>>, %arg3: memref<32x32xbf16, #tpu.memory_space<vmem>>, %arg4: memref<1x32xf32, #tpu.memory_space<vmem>>, %arg5: memref<1x32xf32, #tpu.memory_space<vmem>>, %arg6: memref<512x32xbf16, #tpu.memory_space<vmem>>) attributes {dimension_semantics = [#tpu.dimension_semantics<parallel>, #tpu.dimension_semantics<parallel>], iteration_bounds = array<i64: 4, 1>, scalar_prefetch = 0 : i64, scratch_operands = 0 : i64, tpu.core_type = #tpu.core_type<tc>, window_params = [{transform_indices = @transform_0, window_bounds = array<i64: 512, 32>}, {transform_indices = @transform_1, window_bounds = array<i64: 32, 32>}, {transform_indices = @transform_2, window_bounds = array<i64: 1, 32>}, {transform_indices = @transform_3, window_bounds = array<i64: 1, 32>}, {transform_indices = @transform_4, window_bounds = array<i64: 512, 32>}]} {
    %c0 = arith.constant 0 : index
    %c0_0 = arith.constant 0 : index
    %0 = vector.load %arg2[%c0, %c0_0] : memref<512x32xbf16, #tpu.memory_space<vmem>>, vector<512x32xbf16>
    %c0_1 = arith.constant 0 : index
    %c0_2 = arith.constant 0 : index
    %1 = vector.load %arg3[%c0_1, %c0_2] : memref<32x32xbf16, #tpu.memory_space<vmem>>, vector<32x32xbf16>
    %cst = arith.constant dense<0.000000e+00> : vector<512x32xf32>
    %2 = tpu.matmul %0, %1, %cst {dimension_numbers = #tpu.dot_dimension_numbers<[1], [0], [0], [1], [0, 0, 1, 1], [], []>} : vector<512x32xbf16>, vector<32x32xbf16>, vector<512x32xf32> -> vector<512x32xf32>
    %c0_3 = arith.constant 0 : index
    %c0_4 = arith.constant 0 : index
    %3 = vector.load %arg4[%c0_3, %c0_4] : memref<1x32xf32, #tpu.memory_space<vmem>>, vector<1x32xf32>
    %c0_5 = arith.constant 0 : index
    %c0_6 = arith.constant 0 : index
    %4 = vector.load %arg5[%c0_5, %c0_6] : memref<1x32xf32, #tpu.memory_space<vmem>>, vector<1x32xf32>
    %5 = vector.broadcast %3 : vector<1x32xf32> to vector<512x32xf32>
    %6 = arith.mulf %2, %5 : vector<512x32xf32>
    %7 = vector.broadcast %4 : vector<1x32xf32> to vector<512x32xf32>
    %8 = arith.addf %6, %7 : vector<512x32xf32>
    %cst_7 = arith.constant 0.000000e+00 : f32
    %9 = vector.broadcast %cst_7 : f32 to vector<512x32xf32>
    %10 = arith.maximumf %8, %9 : vector<512x32xf32>
    %11 = arith.truncf %10 : vector<512x32xf32> to vector<512x32xbf16>
    %c0_8 = arith.constant 0 : index
    %c0_9 = arith.constant 0 : index
    %12 = vector.load %arg6[%c0_8, %c0_9] : memref<512x32xbf16, #tpu.memory_space<vmem>>, vector<512x32xbf16>
    tpu.vector_store %arg6[%c0_8, %c0_9], %11 {strides = array<i32>} : memref<512x32xbf16, #tpu.memory_space<vmem>>, vector<512x32xbf16>,
    return
  }
  func.func @transform_0(%arg0: i32, %arg1: i32) -> (i32, i32) {
    %c0_i32 = arith.constant 0 : i32
    %c0_i32_0 = arith.constant 0 : i32
    return %arg0, %c0_i32 : i32, i32
  }
  func.func @transform_1(%arg0: i32, %arg1: i32) -> (i32, i32) {
    %c0_i32 = arith.constant 0 : i32
    %c0_i32_0 = arith.constant 0 : i32
    return %c0_i32, %arg1 : i32, i32
  }
  func.func @transform_2(%arg0: i32, %arg1: i32) -> (i32, i32) {
    %c0_i32 = arith.constant 0 : i32
    %c0_i32_0 = arith.constant 0 : i32
    return %c0_i32, %arg1 : i32, i32
  }
  func.func @transform_3(%arg0: i32, %arg1: i32) -> (i32, i32) {
    %c0_i32 = arith.constant 0 : i32
    %c0_i32_0 = arith.constant 0 : i32
    return %c0_i32, %arg1 : i32, i32
  }
  func.func @transform_4(%arg0: i32, %arg1: i32) -> (i32, i32) {
    %c0_i32 = arith.constant 0 : i32
    return %arg0, %arg1 : i32, i32
  }
}

</mosaic_0001>

<bundles_post_ra>
// kernel: _stem_impl.1
= control target key start
LH: loop header
LB: loop body
LE: loop exit
PB: predicated region body
PF: predicated region fallthrough
CT: control target
= control target key end

     0   :  { %9 = vsyncpa [#allocation3], 0  ;;  %s2054_s0 = inlined_call_operand.vmem [shape: bf16[2048,32], index: 0, kind: input, shape index: {}]   ;;  %s2055_s1 = inlined_call_operand.vmem [shape: bf16[32,32], index: 1, kind: input, shape index: {}]   ;;  %s2056_s2 = inlined_call_operand.vmem [shape: f32[1,32], index: 2, kind: input, shape index: {}]   ;;  %s2057_s3 = inlined_call_operand.vmem [shape: f32[1,32], index: 3, kind: input, shape index: {}]   ;;  %s2058_s4 = inlined_call_operand.hbm [shape: bf16[2048,32], index: 4, kind: output, shape index: {}]  }
   0x1   :  { %11 = vsyncpa [#allocation3 + $0x1], 0  ;;  %s1613_s15 = smov 0   ;;  %s1615_s16 = smov 0  }
   0x2   :  { %s1617_s17 = smov 0   ;;  %s1619_s18 = smov 0  }
   0x3   :  { %s1621_s19 = smov 0   ;;  %s1623_s20 = smov 0  }
   0x4 LB: > { %s1222_s21 = sadd.s32 4294967295, %s1584_s20   ;;  %s1223_s22 = sadd.s32 4294967294, %s1584_s20   ;;  %s1584_s20 = sphi %s1623_s20, %s17_s20   ;;  %s1580_s19 = sphi %s1621_s19, %s2065_s19   ;;  %s1576_s18 = sphi %s1619_s18, %s2064_s18   ;;  %s1572_s17 = sphi %s1617_s17, %s2063_s17   ;;  %s1568_s16 = sphi %s1615_s16, %s2062_s16   ;;  %s1564_s15 = sphi %s1613_s15, %s2061_s15  }
   0x5   : > { %s29_s23 = sadd.s32 1, %s1580_s19  ;;  %s142_s24 = sadd.s32 1, %s1572_s17 }
   0x6   : > { %p31_p0 = scmp.ge.s32.totalorder %s29_s23, 4  ;;  %p152_p1 = scmp.ne.s32.totalorder %s1572_s17, %s1568_s16 }
   0x7   : > { %p153_p2 = scmp.eq.s32.totalorder %s1222_s21, 3  ;;  %p158_p3 = scmp.ne.s32.totalorder %s1568_s16, %s1564_s15 }
   0x8   : > { %s2067_s23 = smov (%p31_p0, %s29_s23), 0  ;;  %p159_p5 = scmp.eq.s32.totalorder %s1223_s22, 3 }
   0x9   : > { %p1653_p4 = por %p153_p2, %p152_p1  ;;  %s137_s26 = ssub.s32 %s1580_s19, %s2067_s23 }
   0xa   : > { %p1229_p6 = scmp.ge.s32.totalorder %s1584_s20, 1  ;;  %p140_p7 = scmp.eq.s32.totalorder %s137_s26, 0 }
   0xb   : > { %p1660_p8 = por %p159_p5, %p158_p3  ;;  %p205_p9 = scmp.lt.s32.totalorder %s1584_s20, 5 }
   0xc   : > { %s1666_s28 = scalar_select %p140_p7, %s1572_s17, %s142_s24  }
   0xd   : > { %p206_p10 = pnand %p1229_p6, %p205_p9 }
   0xe   : > { %s1231_s5 = sshll.u32 (!%p206_p10), %s1576_s18, 6  ;;  %s238_s22 = sand.u32 (!%p206_p10), 1, %s1568_s16  }
   0xf   : > { %209 = sbr.rel (%p206_p10) target bundleno = 294 (0x126), region = 36  ;;  %p242_p11 = scmp.lt.s32.totalorder (!%p206_p10), %s1231_s5, 255 }
  0x10   : > { %s1230_s24 = sshll.u32 (!%p206_p10), %s238_s22, 8  ;;  %s1440_s29 = sshll.u32 (!%p206_p10), %s1576_s18, 8 }
  0x11   : > { %s1763_s26 = scalar_lea.vmem (!%p206_p10), [#allocation2], %s1230_s24  ;;  %s1107_s6 = scalar_lea.hbm (!%p206_p10), %s2058_s4, %s1440_s29 }
  0x12   : > { %s1108_s18 = sshll.u32 (!%p206_p10), %s1763_s26, 4  ;;  %s1110_s7 = sshll.u32 (!%p206_p10), %s1107_s6, 4  ;;  %s1109_s18 = int_to_ptr.vmem [resolvable:$true] %s1108_s18  ;;  %s1111_s7 = int_to_ptr.hbm [resolvable:$true] %s1110_s7 }
  0x13   : > { %s1520_s9 = sshra.s32 (!%p206_p10), %s1111_s7, 4  ;;  %s1526_s13 = scalar_lea.hbm (!%p206_p10), %s2058_s4, 1024  ;;  %s1521_s9 = int_to_ptr.hbm [resolvable:$true] %s1520_s9 }
  0x14   : > { %v1439_v0 = vld [vmem:[%s2055_s1 + $0x8] sm:$0xff]  ;;  %v1438_v1 = vld [vmem:[%s2055_s1] sm:$0xff]  ;;  %s2069_s5 = smov (!%p242_p11, %s1231_s5), 255  ;;  %vm499_vm0 = vcmask 261120   ;;  %vm1029_vm1 = vcmask 257024   ;;  %s1522_s10 = scalar_lea.hbm %s1521_s9, 256 }
  0x15   : > { %602 = vmatpush.bf16.msra.mxu0 %v1439_v0  ;;  %1441 = vmatpush.bf16.msra.mxu1 %v1439_v0  ;;  %s1232_s8 = sshll.u32 %s2069_s5, 2  ;;  %v1747_v34 = vld [vmem:[%s2056_s2] ss:$0 sm:$0xff]  ;;  %p1523_p12 = scmp.ne.s32.totalorder %s1521_s9, %s1522_s10 }
  0x16   : > { %1442 = vmatpush.bf16.msra.mxu2 %v1439_v0  ;;  %1443 = vmatpush.bf16.msra.mxu3 %v1439_v0  ;;  %s1678_s11 = scalar_lea.vmem %s2054_s0, %s1232_s8  ;;  %v1752_v35 = vld [vmem:[%s2057_s3] ss:$0 sm:$0xff]  ;;  %s1095_s8 = scalar_lea.sflag [#allocation3], %s238_s22 }
  0x17   : > { %v1406_v2 = vld [vmem:[%s1678_s11] sm:$0xff]  ;;  %v1407_v6 = vld [vmem:[%s1678_s11 + $0x8] sm:$0xff]  ;;  %v1408_v10 = vld [vmem:[%s1678_s11 + $0x10] sm:$0xff]  ;;  %p1524_p13 = pnand %p1523_p12, %p1653_p4  ;;  %p1527_p1 = scmp.lt.s32.totalorder %s1521_s9, %s2058_s4 }
  0x18   : > { %v1414_v3 = vld [vmem:[%s1678_s11 + $0x40] sm:$0xff]  ;;  %v1415_v7 = vld [vmem:[%s1678_s11 + $0x48] sm:$0xff]  ;;  %v1416_v11 = vld [vmem:[%s1678_s11 + $0x50] sm:$0xff]  ;;  %p1528_p2 = scmp.lt.s32.totalorder %s1526_s13, %s1522_s10 }
  0x19   : > { %603 = vmatpush.bf16.msra.mxu0 %v1438_v1  ;;  %1444 = vmatpush.bf16.msra.mxu1 %v1438_v1  ;;  %v1422_v4 = vld [vmem:[%s1678_s11 + $0x80] sm:$0xff]  ;;  %v1423_v8 = vld [vmem:[%s1678_s11 + $0x88] sm:$0xff]  ;;  %v1424_v12 = vld [vmem:[%s1678_s11 + $0x90] sm:$0xff]  ;;  %p1525_p0 = pneg %p1524_p13 }
  0x1a   : > { %1445 = vmatpush.bf16.msra.mxu2 %v1438_v1  ;;  %1446 = vmatpush.bf16.msra.mxu3 %v1438_v1  ;;  %v1430_v5 = vld [vmem:[%s1678_s11 + $0xc0] sm:$0xff]  ;;  %v1431_v9 = vld [vmem:[%s1678_s11 + $0xc8] sm:$0xff]  ;;  %v1432_v13 = vld [vmem:[%s1678_s11 + $0xd0] sm:$0xff]  ;;  %p1529_p3 = por %p1528_p2, %p1527_p1 }
  0x1b   : > { %v1409_v14 = vld [vmem:[%s1678_s11 + $0x18] sm:$0xff]  ;;  %v1410_v18 = vld [vmem:[%s1678_s11 + $0x20] sm:$0xff]  ;;  %v1411_v22 = vld [vmem:[%s1678_s11 + $0x28] sm:$0xff] }
  0x1c   : > { %1369 = vmatmul.msk.bf16.vlgmr.msra.gmra.mxu0 %vm499_vm0, %v1406_v2  ;;  %1377 = vmatmul.msk.bf16.vlgmr.msra.gmra.mxu1 %vm499_vm0, %v1414_v3  ;;  %v1417_v15 = vld [vmem:[%s1678_s11 + $0x58] sm:$0xff]  ;;  %v1418_v19 = vld [vmem:[%s1678_s11 + $0x60] sm:$0xff]  ;;  %v1419_v23 = vld [vmem:[%s1678_s11 + $0x68] sm:$0xff]  ;;  %p1530_p5 = pnand %p1529_p3, %p1525_p0 }
  0x1d   : > { %1385 = vmatmul.msk.bf16.vlgmr.msra.gmra.mxu2 %vm499_vm0, %v1422_v4  ;;  %1393 = vmatmul.msk.bf16.vlgmr.msra.gmra.mxu3 %vm499_vm0, %v1430_v5  ;;  %v1425_v16 = vld [vmem:[%s1678_s11 + $0x98] sm:$0xff]  ;;  %v1426_v20 = vld [vmem:[%s1678_s11 + $0xa0] sm:$0xff]  ;;  %v1427_v24 = vld [vmem:[%s1678_s11 + $0xa8] sm:$0xff] }
  0x1e   : > { %v1433_v17 = vld [vmem:[%s1678_s11 + $0xd8] sm:$0xff]  ;;  %v1434_v21 = vld [vmem:[%s1678_s11 + $0xe0] sm:$0xff]  ;;  %v1435_v25 = vld [vmem:[%s1678_s11 + $0xe8] sm:$0xff] }
  0x1f   : > { %v1412_v26 = vld [vmem:[%s1678_s11 + $0x30] sm:$0xff]  ;;  %v1413_v30 = vld [vmem:[%s1678_s11 + $0x38] sm:$0xff] }
  0x20   : > { %v1420_v27 = vld [vmem:[%s1678_s11 + $0x70] sm:$0xff]  ;;  %v1421_v31 = vld [vmem:[%s1678_s11 + $0x78] sm:$0xff] }
  0x21   : > { %v1428_v28 = vld [vmem:[%s1678_s11 + $0xb0] sm:$0xff]  ;;  %v1429_v32 = vld [vmem:[%s1678_s11 + $0xb8] sm:$0xff] }
  0x22   : > { %v1436_v29 = vld [vmem:[%s1678_s11 + $0xf0] sm:$0xff]  ;;  %v1437_v33 = vld [vmem:[%s1678_s11 + $0xf8] sm:$0xff] }
  0x2c   : > { %1370 = vmatmul.msk.bf16.gmra.mxu0 %vm499_vm0, %v1407_v6  ;;  %1378 = vmatmul.msk.bf16.gmra.mxu1 %vm499_vm0, %v1415_v7 }
  0x2d   : > { %1386 = vmatmul.msk.bf16.gmra.mxu2 %vm499_vm0, %v1423_v8  ;;  %1394 = vmatmul.msk.bf16.gmra.mxu3 %vm499_vm0, %v1431_v9 }
  0x3c   : > { %1371 = vmatmul.msk.bf16.gmra.mxu0 %vm499_vm0, %v1408_v10  ;;  %1379 = vmatmul.msk.bf16.gmra.mxu1 %vm499_vm0, %v1416_v11 }
  0x3d   : > { %1387 = vmatmul.msk.bf16.gmra.mxu2 %vm499_vm0, %v1424_v12  ;;  %1395 = vmatmul.msk.bf16.gmra.mxu3 %vm499_vm0, %v1432_v13 }
  0x4c   : > { %1372 = vmatmul.msk.bf16.gmra.mxu0 %vm499_vm0, %v1409_v14  ;;  %1380 = vmatmul.msk.bf16.gmra.mxu1 %vm499_vm0, %v1417_v15 }
  0x4d   : > { %1388 = vmatmul.msk.bf16.gmra.mxu2 %vm499_vm0, %v1425_v16  ;;  %1396 = vmatmul.msk.bf16.gmra.mxu3 %vm499_vm0, %v1433_v17 }
  0x5c   : > { %1373 = vmatmul.msk.bf16.gmra.mxu0 %vm499_vm0, %v1410_v18  ;;  %1381 = vmatmul.msk.bf16.gmra.mxu1 %vm499_vm0, %v1418_v19 }
  0x5d   : > { %1389 = vmatmul.msk.bf16.gmra.mxu2 %vm499_vm0, %v1426_v20  ;;  %1397 = vmatmul.msk.bf16.gmra.mxu3 %vm499_vm0, %v1434_v21 }
  0x6c   : > { %1374 = vmatmul.msk.bf16.gmra.mxu0 %vm499_vm0, %v1411_v22  ;;  %1382 = vmatmul.msk.bf16.gmra.mxu1 %vm499_vm0, %v1419_v23 }
  0x6d   : > { %1390 = vmatmul.msk.bf16.gmra.mxu2 %vm499_vm0, %v1427_v24  ;;  %1398 = vmatmul.msk.bf16.gmra.mxu3 %vm499_vm0, %v1435_v25 }
  0x7c   : > { %1375 = vmatmul.msk.bf16.gmra.mxu0 %vm499_vm0, %v1412_v26  ;;  %1383 = vmatmul.msk.bf16.gmra.mxu1 %vm499_vm0, %v1420_v27 }
  0x7d   : > { %1391 = vmatmul.msk.bf16.gmra.mxu2 %vm499_vm0, %v1428_v28  ;;  %1399 = vmatmul.msk.bf16.gmra.mxu3 %vm499_vm0, %v1436_v29 }
  0x8c   : > { %1376 = vmatmul.msk.bf16.gmra.mxu0 %vm499_vm0, %v1413_v30  ;;  %1384 = vmatmul.msk.bf16.gmra.mxu1 %vm499_vm0, %v1421_v31 }
  0x8d   : > { %1392 = vmatmul.msk.bf16.gmra.mxu2 %vm499_vm0, %v1429_v32  ;;  %1400 = vmatmul.msk.bf16.gmra.mxu3 %vm499_vm0, %v1437_v33 }
  0x99   : > { %v605_v36 = vpop.f32.mrf.mxu0  ;;  %v645_v37 = vpop.f32.mrf.mxu1 }
  0x9a   : > { %v770_v38 = vmul.f32 %v1747_v34, %v605_v36  ;;  %v786_v39 = vmul.f32 %v1747_v34, %v645_v37 }
  0x9c   : > { %v837_v40 = vadd.f32 %v1752_v35, %v770_v38  ;;  %v853_v41 = vadd.f32 %v1752_v35, %v786_v39 }
  0x9e   : > { %v901_v42 = vmax.f32 %v837_v40, 0.0  ;;  %v917_v43 = vmax.f32 %v853_v41, 0.0 }
  0xa0   : > { %v965_v44 = vpack.c.bf16 %v901_v42, %v901_v42  ;;  %v981_v45 = vpack.c.bf16 %v917_v43, %v917_v43  ;;  %v685_v46 = vpop.f32.mrf.mxu2  ;;  %v725_v47 = vpop.f32.mrf.mxu3 }
  0xa1   : > { %v802_v48 = vmul.f32 %v1747_v34, %v685_v46  ;;  %v818_v49 = vmul.f32 %v1747_v34, %v725_v47  ;;  %v607_v50 = vpop.f32.mrf.mxu0  ;;  %v647_v51 = vpop.f32.mrf.mxu1 }
  0xa2   : > { %1030 = vst.msk [vmem:[%s1763_s26] sm:$0xf] %vm1029_vm1, %v965_v44  ;;  %v771_v52 = vmul.f32 %v1747_v34, %v607_v50  ;;  %v787_v53 = vmul.f32 %v1747_v34, %v647_v51 }
  0xa3   : > { %1046 = vst.msk [vmem:[%s1763_s26 + $0x40] sm:$0xf] %vm1029_vm1, %v981_v45  ;;  %v869_v54 = vadd.f32 %v1752_v35, %v802_v48  ;;  %v885_v55 = vadd.f32 %v1752_v35, %v818_v49 }
  0xa4   : > { %v838_v56 = vadd.f32 %v1752_v35, %v771_v52  ;;  %v854_v57 = vadd.f32 %v1752_v35, %v787_v53 }
  0xa5   : > { %v933_v58 = vmax.f32 %v869_v54, 0.0  ;;  %v949_v59 = vmax.f32 %v885_v55, 0.0 }
  0xa6   : > { %v902_v60 = vmax.f32 %v838_v56, 0.0  ;;  %v918_v61 = vmax.f32 %v854_v57, 0.0 }
  0xa7   : > { %v997_v62 = vpack.c.bf16 %v933_v58, %v933_v58  ;;  %v1013_v63 = vpack.c.bf16 %v949_v59, %v949_v59 }
  0xa8   : > { %v966_v0 = vpack.c.bf16 %v902_v60, %v902_v60  ;;  %v982_v1 = vpack.c.bf16 %v918_v61, %v918_v61  ;;  %v687_v2 = vpop.f32.mrf.mxu2  ;;  %v727_v3 = vpop.f32.mrf.mxu3 }
  0xa9   : > { %1062 = vst.msk [vmem:[%s1763_s26 + $0x80] sm:$0xf] %vm1029_vm1, %v997_v62  ;;  %v803_v4 = vmul.f32 %v1747_v34, %v687_v2  ;;  %v819_v5 = vmul.f32 %v1747_v34, %v727_v3  ;;  %v610_v6 = vpop.f32.mrf.mxu0  ;;  %v650_v7 = vpop.f32.mrf.mxu1 }
  0xaa   : > { %1078 = vst.msk [vmem:[%s1763_s26 + $0xc0] sm:$0xf] %vm1029_vm1, %v1013_v63  ;;  %v772_v8 = vmul.f32 %v1747_v34, %v610_v6  ;;  %v788_v9 = vmul.f32 %v1747_v34, %v650_v7 }
  0xab   : > { %1031 = vst.msk [vmem:[%s1763_s26 + $0x4] sm:$0xf] %vm1029_vm1, %v966_v0  ;;  %v870_v10 = vadd.f32 %v1752_v35, %v803_v4  ;;  %v886_v11 = vadd.f32 %v1752_v35, %v819_v5 }
  0xac   : > { %1047 = vst.msk [vmem:[%s1763_s26 + $0x44] sm:$0xf] %vm1029_vm1, %v982_v1  ;;  %v839_v12 = vadd.f32 %v1752_v35, %v772_v8  ;;  %v855_v13 = vadd.f32 %v1752_v35, %v788_v9 }
  0xad   : > { %v934_v14 = vmax.f32 %v870_v10, 0.0  ;;  %v950_v15 = vmax.f32 %v886_v11, 0.0 }
  0xae   : > { %v903_v16 = vmax.f32 %v839_v12, 0.0  ;;  %v919_v17 = vmax.f32 %v855_v13, 0.0 }
  0xaf   : > { %v998_v18 = vpack.c.bf16 %v934_v14, %v934_v14  ;;  %v1014_v19 = vpack.c.bf16 %v950_v15, %v950_v15 }
  0xb0   : > { %v967_v20 = vpack.c.bf16 %v903_v16, %v903_v16  ;;  %v983_v21 = vpack.c.bf16 %v919_v17, %v919_v17  ;;  %v690_v22 = vpop.f32.mrf.mxu2  ;;  %v730_v23 = vpop.f32.mrf.mxu3 }
  0xb1   : > { %1063 = vst.msk [vmem:[%s1763_s26 + $0x84] sm:$0xf] %vm1029_vm1, %v998_v18  ;;  %v804_v24 = vmul.f32 %v1747_v34, %v690_v22  ;;  %v820_v25 = vmul.f32 %v1747_v34, %v730_v23  ;;  %v612_v26 = vpop.f32.mrf.mxu0  ;;  %v652_v27 = vpop.f32.mrf.mxu1 }
  0xb2   : > { %1079 = vst.msk [vmem:[%s1763_s26 + $0xc4] sm:$0xf] %vm1029_vm1, %v1014_v19  ;;  %v773_v28 = vmul.f32 %v1747_v34, %v612_v26  ;;  %v789_v29 = vmul.f32 %v1747_v34, %v652_v27 }
  0xb3   : > { %1032 = vst.msk [vmem:[%s1763_s26 + $0x8] sm:$0xf] %vm1029_vm1, %v967_v20  ;;  %v871_v30 = vadd.f32 %v1752_v35, %v804_v24  ;;  %v887_v31 = vadd.f32 %v1752_v35, %v820_v25 }
  0xb4   : > { %1048 = vst.msk [vmem:[%s1763_s26 + $0x48] sm:$0xf] %vm1029_vm1, %v983_v21  ;;  %v840_v32 = vadd.f32 %v1752_v35, %v773_v28  ;;  %v856_v33 = vadd.f32 %v1752_v35, %v789_v29 }
  0xb5   : > { %v935_v36 = vmax.f32 %v871_v30, 0.0  ;;  %v951_v37 = vmax.f32 %v887_v31, 0.0 }
  0xb6   : > { %v904_v38 = vmax.f32 %v840_v32, 0.0  ;;  %v920_v39 = vmax.f32 %v856_v33, 0.0 }
  0xb7   : > { %v999_v40 = vpack.c.bf16 %v935_v36, %v935_v36  ;;  %v1015_v41 = vpack.c.bf16 %v951_v37, %v951_v37 }
  0xb8   : > { %v968_v42 = vpack.c.bf16 %v904_v38, %v904_v38  ;;  %v984_v43 = vpack.c.bf16 %v920_v39, %v920_v39  ;;  %v692_v44 = vpop.f32.mrf.mxu2  ;;  %v732_v45 = vpop.f32.mrf.mxu3 }
  0xb9   : > { %1064 = vst.msk [vmem:[%s1763_s26 + $0x88] sm:$0xf] %vm1029_vm1, %v999_v40  ;;  %v805_v46 = vmul.f32 %v1747_v34, %v692_v44  ;;  %v821_v47 = vmul.f32 %v1747_v34, %v732_v45  ;;  %v615_v48 = vpop.f32.mrf.mxu0  ;;  %v655_v49 = vpop.f32.mrf.mxu1 }
  0xba   : > { %1080 = vst.msk [vmem:[%s1763_s26 + $0xc8] sm:$0xf] %vm1029_vm1, %v1015_v41  ;;  %v774_v50 = vmul.f32 %v1747_v34, %v615_v48  ;;  %v790_v51 = vmul.f32 %v1747_v34, %v655_v49 }
  0xbb   : > { %1033 = vst.msk [vmem:[%s1763_s26 + $0xc] sm:$0xf] %vm1029_vm1, %v968_v42  ;;  %v872_v52 = vadd.f32 %v1752_v35, %v805_v46  ;;  %v888_v53 = vadd.f32 %v1752_v35, %v821_v47 }
  0xbc   : > { %1049 = vst.msk [vmem:[%s1763_s26 + $0x4c] sm:$0xf] %vm1029_vm1, %v984_v43  ;;  %v841_v54 = vadd.f32 %v1752_v35, %v774_v50  ;;  %v857_v55 = vadd.f32 %v1752_v35, %v790_v51 }
  0xbd   : > { %v936_v56 = vmax.f32 %v872_v52, 0.0  ;;  %v952_v57 = vmax.f32 %v888_v53, 0.0 }
  0xbe   : > { %v905_v58 = vmax.f32 %v841_v54, 0.0  ;;  %v921_v59 = vmax.f32 %v857_v55, 0.0 }
  0xbf   : > { %v1000_v60 = vpack.c.bf16 %v936_v56, %v936_v56  ;;  %v1016_v61 = vpack.c.bf16 %v952_v57, %v952_v57 }
  0xc0   : > { %v969_v62 = vpack.c.bf16 %v905_v58, %v905_v58  ;;  %v985_v63 = vpack.c.bf16 %v921_v59, %v921_v59  ;;  %v695_v0 = vpop.f32.mrf.mxu2  ;;  %v735_v1 = vpop.f32.mrf.mxu3 }
  0xc1   : > { %1065 = vst.msk [vmem:[%s1763_s26 + $0x8c] sm:$0xf] %vm1029_vm1, %v1000_v60  ;;  %v806_v2 = vmul.f32 %v1747_v34, %v695_v0  ;;  %v822_v3 = vmul.f32 %v1747_v34, %v735_v1  ;;  %v617_v4 = vpop.f32.mrf.mxu0  ;;  %v657_v5 = vpop.f32.mrf.mxu1 }
  0xc2   : > { %1081 = vst.msk [vmem:[%s1763_s26 + $0xcc] sm:$0xf] %vm1029_vm1, %v1016_v61  ;;  %v775_v6 = vmul.f32 %v1747_v34, %v617_v4  ;;  %v791_v7 = vmul.f32 %v1747_v34, %v657_v5 }
  0xc3   : > { %1034 = vst.msk [vmem:[%s1763_s26 + $0x10] sm:$0xf] %vm1029_vm1, %v969_v62  ;;  %v873_v8 = vadd.f32 %v1752_v35, %v806_v2  ;;  %v889_v9 = vadd.f32 %v1752_v35, %v822_v3 }
  0xc4   : > { %1050 = vst.msk [vmem:[%s1763_s26 + $0x50] sm:$0xf] %vm1029_vm1, %v985_v63  ;;  %v842_v10 = vadd.f32 %v1752_v35, %v775_v6  ;;  %v858_v11 = vadd.f32 %v1752_v35, %v791_v7 }
  0xc5   : > { %v937_v12 = vmax.f32 %v873_v8, 0.0  ;;  %v953_v13 = vmax.f32 %v889_v9, 0.0 }
  0xc6   : > { %v906_v14 = vmax.f32 %v842_v10, 0.0  ;;  %v922_v15 = vmax.f32 %v858_v11, 0.0 }
  0xc7   : > { %v1001_v16 = vpack.c.bf16 %v937_v12, %v937_v12  ;;  %v1017_v17 = vpack.c.bf16 %v953_v13, %v953_v13 }
  0xc8   : > { %v970_v18 = vpack.c.bf16 %v906_v14, %v906_v14  ;;  %v986_v19 = vpack.c.bf16 %v922_v15, %v922_v15  ;;  %v697_v20 = vpop.f32.mrf.mxu2  ;;  %v737_v21 = vpop.f32.mrf.mxu3 }
  0xc9   : > { %1066 = vst.msk [vmem:[%s1763_s26 + $0x90] sm:$0xf] %vm1029_vm1, %v1001_v16  ;;  %v807_v22 = vmul.f32 %v1747_v34, %v697_v20  ;;  %v823_v23 = vmul.f32 %v1747_v34, %v737_v21  ;;  %v620_v24 = vpop.f32.mrf.mxu0  ;;  %v660_v25 = vpop.f32.mrf.mxu1 }
  0xca   : > { %1082 = vst.msk [vmem:[%s1763_s26 + $0xd0] sm:$0xf] %vm1029_vm1, %v1017_v17  ;;  %v776_v26 = vmul.f32 %v1747_v34, %v620_v24  ;;  %v792_v27 = vmul.f32 %v1747_v34, %v660_v25 }
  0xcb   : > { %1035 = vst.msk [vmem:[%s1763_s26 + $0x14] sm:$0xf] %vm1029_vm1, %v970_v18  ;;  %v874_v28 = vadd.f32 %v1752_v35, %v807_v22  ;;  %v890_v29 = vadd.f32 %v1752_v35, %v823_v23 }
  0xcc   : > { %1051 = vst.msk [vmem:[%s1763_s26 + $0x54] sm:$0xf] %vm1029_vm1, %v986_v19  ;;  %v843_v30 = vadd.f32 %v1752_v35, %v776_v26  ;;  %v859_v31 = vadd.f32 %v1752_v35, %v792_v27 }
  0xcd   : > { %v938_v32 = vmax.f32 %v874_v28, 0.0  ;;  %v954_v33 = vmax.f32 %v890_v29, 0.0 }
  0xce   : > { %v907_v36 = vmax.f32 %v843_v30, 0.0  ;;  %v923_v37 = vmax.f32 %v859_v31, 0.0 }
  0xcf   : > { %v1002_v38 = vpack.c.bf16 %v938_v32, %v938_v32  ;;  %v1018_v39 = vpack.c.bf16 %v954_v33, %v954_v33 }
  0xd0   : > { %v971_v40 = vpack.c.bf16 %v907_v36, %v907_v36  ;;  %v987_v41 = vpack.c.bf16 %v923_v37, %v923_v37  ;;  %v700_v42 = vpop.f32.mrf.mxu2  ;;  %v740_v43 = vpop.f32.mrf.mxu3 }
  0xd1   : > { %1067 = vst.msk [vmem:[%s1763_s26 + $0x94] sm:$0xf] %vm1029_vm1, %v1002_v38  ;;  %v808_v44 = vmul.f32 %v1747_v34, %v700_v42  ;;  %v824_v45 = vmul.f32 %v1747_v34, %v740_v43  ;;  %v622_v46 = vpop.f32.mrf.mxu0  ;;  %v662_v47 = vpop.f32.mrf.mxu1 }
  0xd2   : > { %1083 = vst.msk [vmem:[%s1763_s26 + $0xd4] sm:$0xf] %vm1029_vm1, %v1018_v39  ;;  %v777_v48 = vmul.f32 %v1747_v34, %v622_v46  ;;  %v793_v49 = vmul.f32 %v1747_v34, %v662_v47 }
  0xd3   : > { %1036 = vst.msk [vmem:[%s1763_s26 + $0x18] sm:$0xf] %vm1029_vm1, %v971_v40  ;;  %v875_v50 = vadd.f32 %v1752_v35, %v808_v44  ;;  %v891_v51 = vadd.f32 %v1752_v35, %v824_v45 }
  0xd4   : > { %1052 = vst.msk [vmem:[%s1763_s26 + $0x58] sm:$0xf] %vm1029_vm1, %v987_v41  ;;  %v844_v52 = vadd.f32 %v1752_v35, %v777_v48  ;;  %v860_v53 = vadd.f32 %v1752_v35, %v793_v49 }
  0xd5   : > { %v939_v54 = vmax.f32 %v875_v50, 0.0  ;;  %v955_v55 = vmax.f32 %v891_v51, 0.0 }
  0xd6   : > { %v908_v56 = vmax.f32 %v844_v52, 0.0  ;;  %v924_v57 = vmax.f32 %v860_v53, 0.0 }
  0xd7   : > { %v1003_v58 = vpack.c.bf16 %v939_v54, %v939_v54  ;;  %v1019_v59 = vpack.c.bf16 %v955_v55, %v955_v55 }
  0xd8   : > { %v972_v60 = vpack.c.bf16 %v908_v56, %v908_v56  ;;  %v988_v61 = vpack.c.bf16 %v924_v57, %v924_v57  ;;  %v702_v62 = vpop.f32.mrf.mxu2  ;;  %v742_v63 = vpop.f32.mrf.mxu3 }
  0xd9   : > { %1068 = vst.msk [vmem:[%s1763_s26 + $0x98] sm:$0xf] %vm1029_vm1, %v1003_v58  ;;  %v809_v0 = vmul.f32 %v1747_v34, %v702_v62  ;;  %v825_v1 = vmul.f32 %v1747_v34, %v742_v63  ;;  %v625_v2 = vpop.f32.mrf.mxu0  ;;  %v665_v3 = vpop.f32.mrf.mxu1 }
  0xda   : > { %1084 = vst.msk [vmem:[%s1763_s26 + $0xd8] sm:$0xf] %vm1029_vm1, %v1019_v59  ;;  %v778_v4 = vmul.f32 %v1747_v34, %v625_v2  ;;  %v794_v5 = vmul.f32 %v1747_v34, %v665_v3 }
  0xdb   : > { %1037 = vst.msk [vmem:[%s1763_s26 + $0x1c] sm:$0xf] %vm1029_vm1, %v972_v60  ;;  %v876_v6 = vadd.f32 %v1752_v35, %v809_v0  ;;  %v892_v7 = vadd.f32 %v1752_v35, %v825_v1 }
  0xdc   : > { %1053 = vst.msk [vmem:[%s1763_s26 + $0x5c] sm:$0xf] %vm1029_vm1, %v988_v61  ;;  %v845_v8 = vadd.f32 %v1752_v35, %v778_v4  ;;  %v861_v9 = vadd.f32 %v1752_v35, %v794_v5 }
  0xdd   : > { %v940_v10 = vmax.f32 %v876_v6, 0.0  ;;  %v956_v11 = vmax.f32 %v892_v7, 0.0 }
  0xde   : > { %v909_v12 = vmax.f32 %v845_v8, 0.0  ;;  %v925_v13 = vmax.f32 %v861_v9, 0.0 }
  0xdf   : > { %v1004_v14 = vpack.c.bf16 %v940_v10, %v940_v10  ;;  %v1020_v15 = vpack.c.bf16 %v956_v11, %v956_v11 }
  0xe0   : > { %v973_v16 = vpack.c.bf16 %v909_v12, %v909_v12  ;;  %v989_v17 = vpack.c.bf16 %v925_v13, %v925_v13  ;;  %v705_v18 = vpop.f32.mrf.mxu2  ;;  %v745_v19 = vpop.f32.mrf.mxu3 }
  0xe1   : > { %1069 = vst.msk [vmem:[%s1763_s26 + $0x9c] sm:$0xf] %vm1029_vm1, %v1004_v14  ;;  %v810_v20 = vmul.f32 %v1747_v34, %v705_v18  ;;  %v826_v21 = vmul.f32 %v1747_v34, %v745_v19  ;;  %v627_v22 = vpop.f32.mrf.mxu0  ;;  %v667_v23 = vpop.f32.mrf.mxu1 }
  0xe2   : > { %1085 = vst.msk [vmem:[%s1763_s26 + $0xdc] sm:$0xf] %vm1029_vm1, %v1020_v15  ;;  %v779_v24 = vmul.f32 %v1747_v34, %v627_v22  ;;  %v795_v25 = vmul.f32 %v1747_v34, %v667_v23 }
  0xe3   : > { %1038 = vst.msk [vmem:[%s1763_s26 + $0x20] sm:$0xf] %vm1029_vm1, %v973_v16  ;;  %v877_v26 = vadd.f32 %v1752_v35, %v810_v20  ;;  %v893_v27 = vadd.f32 %v1752_v35, %v826_v21 }
  0xe4   : > { %1054 = vst.msk [vmem:[%s1763_s26 + $0x60] sm:$0xf] %vm1029_vm1, %v989_v17  ;;  %v846_v28 = vadd.f32 %v1752_v35, %v779_v24  ;;  %v862_v29 = vadd.f32 %v1752_v35, %v795_v25 }
  0xe5   : > { %v941_v30 = vmax.f32 %v877_v26, 0.0  ;;  %v957_v31 = vmax.f32 %v893_v27, 0.0 }
  0xe6   : > { %v910_v32 = vmax.f32 %v846_v28, 0.0  ;;  %v926_v33 = vmax.f32 %v862_v29, 0.0 }
  0xe7   : > { %v1005_v36 = vpack.c.bf16 %v941_v30, %v941_v30  ;;  %v1021_v37 = vpack.c.bf16 %v957_v31, %v957_v31 }
  0xe8   : > { %v974_v38 = vpack.c.bf16 %v910_v32, %v910_v32  ;;  %v990_v39 = vpack.c.bf16 %v926_v33, %v926_v33  ;;  %v707_v40 = vpop.f32.mrf.mxu2  ;;  %v747_v41 = vpop.f32.mrf.mxu3 }
  0xe9   : > { %1070 = vst.msk [vmem:[%s1763_s26 + $0xa0] sm:$0xf] %vm1029_vm1, %v1005_v36  ;;  %v811_v42 = vmul.f32 %v1747_v34, %v707_v40  ;;  %v827_v43 = vmul.f32 %v1747_v34, %v747_v41  ;;  %v630_v44 = vpop.f32.mrf.mxu0  ;;  %v670_v45 = vpop.f32.mrf.mxu1 }
  0xea   : > { %1086 = vst.msk [vmem:[%s1763_s26 + $0xe0] sm:$0xf] %vm1029_vm1, %v1021_v37  ;;  %v780_v46 = vmul.f32 %v1747_v34, %v630_v44  ;;  %v796_v47 = vmul.f32 %v1747_v34, %v670_v45 }
  0xeb   : > { %1039 = vst.msk [vmem:[%s1763_s26 + $0x24] sm:$0xf] %vm1029_vm1, %v974_v38  ;;  %v878_v48 = vadd.f32 %v1752_v35, %v811_v42  ;;  %v894_v49 = vadd.f32 %v1752_v35, %v827_v43 }
  0xec   : > { %1055 = vst.msk [vmem:[%s1763_s26 + $0x64] sm:$0xf] %vm1029_vm1, %v990_v39  ;;  %v847_v50 = vadd.f32 %v1752_v35, %v780_v46  ;;  %v863_v51 = vadd.f32 %v1752_v35, %v796_v47 }
  0xed   : > { %v942_v52 = vmax.f32 %v878_v48, 0.0  ;;  %v958_v53 = vmax.f32 %v894_v49, 0.0 }
  0xee   : > { %v911_v54 = vmax.f32 %v847_v50, 0.0  ;;  %v927_v55 = vmax.f32 %v863_v51, 0.0 }
  0xef   : > { %v1006_v56 = vpack.c.bf16 %v942_v52, %v942_v52  ;;  %v1022_v57 = vpack.c.bf16 %v958_v53, %v958_v53 }
  0xf0   : > { %v975_v58 = vpack.c.bf16 %v911_v54, %v911_v54  ;;  %v991_v59 = vpack.c.bf16 %v927_v55, %v927_v55  ;;  %v710_v60 = vpop.f32.mrf.mxu2  ;;  %v750_v61 = vpop.f32.mrf.mxu3 }
  0xf1   : > { %1071 = vst.msk [vmem:[%s1763_s26 + $0xa4] sm:$0xf] %vm1029_vm1, %v1006_v56  ;;  %v812_v62 = vmul.f32 %v1747_v34, %v710_v60  ;;  %v828_v63 = vmul.f32 %v1747_v34, %v750_v61  ;;  %v632_v0 = vpop.f32.mrf.mxu0  ;;  %v672_v1 = vpop.f32.mrf.mxu1 }
  0xf2   : > { %1087 = vst.msk [vmem:[%s1763_s26 + $0xe4] sm:$0xf] %vm1029_vm1, %v1022_v57  ;;  %v781_v2 = vmul.f32 %v1747_v34, %v632_v0  ;;  %v797_v3 = vmul.f32 %v1747_v34, %v672_v1 }
  0xf3   : > { %1040 = vst.msk [vmem:[%s1763_s26 + $0x28] sm:$0xf] %vm1029_vm1, %v975_v58  ;;  %v879_v4 = vadd.f32 %v1752_v35, %v812_v62  ;;  %v895_v5 = vadd.f32 %v1752_v35, %v828_v63 }
  0xf4   : > { %1056 = vst.msk [vmem:[%s1763_s26 + $0x68] sm:$0xf] %vm1029_vm1, %v991_v59  ;;  %v848_v6 = vadd.f32 %v1752_v35, %v781_v2  ;;  %v864_v7 = vadd.f32 %v1752_v35, %v797_v3 }
  0xf5   : > { %v943_v8 = vmax.f32 %v879_v4, 0.0  ;;  %v959_v9 = vmax.f32 %v895_v5, 0.0 }
  0xf6   : > { %v912_v10 = vmax.f32 %v848_v6, 0.0  ;;  %v928_v11 = vmax.f32 %v864_v7, 0.0 }
  0xf7   : > { %v1007_v12 = vpack.c.bf16 %v943_v8, %v943_v8  ;;  %v1023_v13 = vpack.c.bf16 %v959_v9, %v959_v9 }
  0xf8   : > { %v976_v14 = vpack.c.bf16 %v912_v10, %v912_v10  ;;  %v992_v15 = vpack.c.bf16 %v928_v11, %v928_v11  ;;  %v712_v16 = vpop.f32.mrf.mxu2  ;;  %v752_v17 = vpop.f32.mrf.mxu3 }
  0xf9   : > { %1072 = vst.msk [vmem:[%s1763_s26 + $0xa8] sm:$0xf] %vm1029_vm1, %v1007_v12  ;;  %v813_v18 = vmul.f32 %v1747_v34, %v712_v16  ;;  %v829_v19 = vmul.f32 %v1747_v34, %v752_v17  ;;  %v635_v20 = vpop.f32.mrf.mxu0  ;;  %v675_v21 = vpop.f32.mrf.mxu1 }
  0xfa   : > { %1088 = vst.msk [vmem:[%s1763_s26 + $0xe8] sm:$0xf] %vm1029_vm1, %v1023_v13  ;;  %v782_v22 = vmul.f32 %v1747_v34, %v635_v20  ;;  %v798_v23 = vmul.f32 %v1747_v34, %v675_v21 }
  0xfb   : > { %1041 = vst.msk [vmem:[%s1763_s26 + $0x2c] sm:$0xf] %vm1029_vm1, %v976_v14  ;;  %v880_v24 = vadd.f32 %v1752_v35, %v813_v18  ;;  %v896_v25 = vadd.f32 %v1752_v35, %v829_v19 }
  0xfc   : > { %1057 = vst.msk [vmem:[%s1763_s26 + $0x6c] sm:$0xf] %vm1029_vm1, %v992_v15  ;;  %v849_v26 = vadd.f32 %v1752_v35, %v782_v22  ;;  %v865_v27 = vadd.f32 %v1752_v35, %v798_v23 }
  0xfd   : > { %v944_v28 = vmax.f32 %v880_v24, 0.0  ;;  %v960_v29 = vmax.f32 %v896_v25, 0.0 }
  0xfe   : > { %v913_v30 = vmax.f32 %v849_v26, 0.0  ;;  %v929_v31 = vmax.f32 %v865_v27, 0.0 }
  0xff   : > { %v1008_v32 = vpack.c.bf16 %v944_v28, %v944_v28  ;;  %v1024_v33 = vpack.c.bf16 %v960_v29, %v960_v29 }
 0x100   : > { %v977_v36 = vpack.c.bf16 %v913_v30, %v913_v30  ;;  %v993_v37 = vpack.c.bf16 %v929_v31, %v929_v31  ;;  %v715_v38 = vpop.f32.mrf.mxu2  ;;  %v755_v39 = vpop.f32.mrf.mxu3 }
 0x101   : > { %1073 = vst.msk [vmem:[%s1763_s26 + $0xac] sm:$0xf] %vm1029_vm1, %v1008_v32  ;;  %v814_v40 = vmul.f32 %v1747_v34, %v715_v38  ;;  %v830_v41 = vmul.f32 %v1747_v34, %v755_v39  ;;  %v637_v42 = vpop.f32.mrf.mxu0  ;;  %v677_v43 = vpop.f32.mrf.mxu1 }
 0x102   : > { %1089 = vst.msk [vmem:[%s1763_s26 + $0xec] sm:$0xf] %vm1029_vm1, %v1024_v33  ;;  %v783_v44 = vmul.f32 %v1747_v34, %v637_v42  ;;  %v799_v45 = vmul.f32 %v1747_v34, %v677_v43 }
 0x103   : > { %1042 = vst.msk [vmem:[%s1763_s26 + $0x30] sm:$0xf] %vm1029_vm1, %v977_v36  ;;  %v881_v46 = vadd.f32 %v1752_v35, %v814_v40  ;;  %v897_v47 = vadd.f32 %v1752_v35, %v830_v41 }
 0x104   : > { %1058 = vst.msk [vmem:[%s1763_s26 + $0x70] sm:$0xf] %vm1029_vm1, %v993_v37  ;;  %v850_v48 = vadd.f32 %v1752_v35, %v783_v44  ;;  %v866_v49 = vadd.f32 %v1752_v35, %v799_v45 }
 0x105   : > { %v945_v50 = vmax.f32 %v881_v46, 0.0  ;;  %v961_v51 = vmax.f32 %v897_v47, 0.0 }
 0x106   : > { %v914_v52 = vmax.f32 %v850_v48, 0.0  ;;  %v930_v53 = vmax.f32 %v866_v49, 0.0 }
 0x107   : > { %v1009_v54 = vpack.c.bf16 %v945_v50, %v945_v50  ;;  %v1025_v55 = vpack.c.bf16 %v961_v51, %v961_v51 }
 0x108   : > { %v978_v56 = vpack.c.bf16 %v914_v52, %v914_v52  ;;  %v994_v57 = vpack.c.bf16 %v930_v53, %v930_v53  ;;  %v717_v58 = vpop.f32.mrf.mxu2  ;;  %v757_v59 = vpop.f32.mrf.mxu3 }
 0x109   : > { %1074 = vst.msk [vmem:[%s1763_s26 + $0xb0] sm:$0xf] %vm1029_vm1, %v1009_v54  ;;  %v815_v60 = vmul.f32 %v1747_v34, %v717_v58  ;;  %v831_v61 = vmul.f32 %v1747_v34, %v757_v59  ;;  %v640_v62 = vpop.f32.mrf.mxu0  ;;  %v680_v63 = vpop.f32.mrf.mxu1 }
 0x10a   : > { %1090 = vst.msk [vmem:[%s1763_s26 + $0xf0] sm:$0xf] %vm1029_vm1, %v1025_v55  ;;  %v784_v0 = vmul.f32 %v1747_v34, %v640_v62  ;;  %v800_v1 = vmul.f32 %v1747_v34, %v680_v63 }
 0x10b   : > { %1043 = vst.msk [vmem:[%s1763_s26 + $0x34] sm:$0xf] %vm1029_vm1, %v978_v56  ;;  %v882_v2 = vadd.f32 %v1752_v35, %v815_v60  ;;  %v898_v3 = vadd.f32 %v1752_v35, %v831_v61 }
 0x10c   : > { %1059 = vst.msk [vmem:[%s1763_s26 + $0x74] sm:$0xf] %vm1029_vm1, %v994_v57  ;;  %v851_v4 = vadd.f32 %v1752_v35, %v784_v0  ;;  %v867_v5 = vadd.f32 %v1752_v35, %v800_v1 }
 0x10d   : > { %v946_v6 = vmax.f32 %v882_v2, 0.0  ;;  %v962_v7 = vmax.f32 %v898_v3, 0.0 }
 0x10e   : > { %v915_v8 = vmax.f32 %v851_v4, 0.0  ;;  %v931_v9 = vmax.f32 %v867_v5, 0.0 }
 0x10f   : > { %v1010_v10 = vpack.c.bf16 %v946_v6, %v946_v6  ;;  %v1026_v11 = vpack.c.bf16 %v962_v7, %v962_v7 }
 0x110   : > { %v979_v12 = vpack.c.bf16 %v915_v8, %v915_v8  ;;  %v995_v13 = vpack.c.bf16 %v931_v9, %v931_v9  ;;  %v720_v14 = vpop.f32.mrf.mxu2  ;;  %v760_v15 = vpop.f32.mrf.mxu3 }
 0x111   : > { %1075 = vst.msk [vmem:[%s1763_s26 + $0xb4] sm:$0xf] %vm1029_vm1, %v1010_v10  ;;  %v816_v16 = vmul.f32 %v1747_v34, %v720_v14  ;;  %v832_v17 = vmul.f32 %v1747_v34, %v760_v15  ;;  %v642_v18 = vpop.f32.mrf.mxu0  ;;  %v682_v19 = vpop.f32.mrf.mxu1 }
 0x112   : > { %1091 = vst.msk [vmem:[%s1763_s26 + $0xf4] sm:$0xf] %vm1029_vm1, %v1026_v11  ;;  %v785_v20 = vmul.f32 %v1747_v34, %v642_v18  ;;  %v801_v21 = vmul.f32 %v1747_v34, %v682_v19 }
 0x113   : > { %1044 = vst.msk [vmem:[%s1763_s26 + $0x38] sm:$0xf] %vm1029_vm1, %v979_v12  ;;  %v883_v22 = vadd.f32 %v1752_v35, %v816_v16  ;;  %v899_v23 = vadd.f32 %v1752_v35, %v832_v17 }
 0x114   : > { %1060 = vst.msk [vmem:[%s1763_s26 + $0x78] sm:$0xf] %vm1029_vm1, %v995_v13  ;;  %v852_v24 = vadd.f32 %v1752_v35, %v785_v20  ;;  %v868_v25 = vadd.f32 %v1752_v35, %v801_v21 }
 0x115   : > { %v947_v26 = vmax.f32 %v883_v22, 0.0  ;;  %v963_v27 = vmax.f32 %v899_v23, 0.0 }
 0x116   : > { %v916_v28 = vmax.f32 %v852_v24, 0.0  ;;  %v932_v29 = vmax.f32 %v868_v25, 0.0 }
 0x117   : > { %v1011_v30 = vpack.c.bf16 %v947_v26, %v947_v26  ;;  %v1027_v31 = vpack.c.bf16 %v963_v27, %v963_v27 }
 0x118   : > { %v980_v32 = vpack.c.bf16 %v916_v28, %v916_v28  ;;  %v996_v33 = vpack.c.bf16 %v932_v29, %v932_v29  ;;  %v722_v36 = vpop.f32.mrf.mxu2  ;;  %v762_v37 = vpop.f32.mrf.mxu3 }
 0x119   : > { %1076 = vst.msk [vmem:[%s1763_s26 + $0xb8] sm:$0xf] %vm1029_vm1, %v1011_v30  ;;  %v817_v38 = vmul.f32 %v1747_v34, %v722_v36  ;;  %v833_v39 = vmul.f32 %v1747_v34, %v762_v37 }
 0x11a   : > { %1092 = vst.msk [vmem:[%s1763_s26 + $0xf8] sm:$0xf] %vm1029_vm1, %v1027_v31 }
 0x11b   : > { %1045 = vst.msk [vmem:[%s1763_s26 + $0x3c] sm:$0xf] %vm1029_vm1, %v980_v32  ;;  %v884_v40 = vadd.f32 %v1752_v35, %v817_v38  ;;  %v900_v41 = vadd.f32 %v1752_v35, %v833_v39 }
 0x11c   : > { %1061 = vst.msk [vmem:[%s1763_s26 + $0x7c] sm:$0xf] %vm1029_vm1, %v996_v33 }
 0x11d   : > { %v948_v34 = vmax.f32 %v884_v40, 0.0  ;;  %v964_v42 = vmax.f32 %v900_v41, 0.0 }
 0x11f   : > { %v1012_v43 = vpack.c.bf16 %v948_v34, %v948_v34  ;;  %v1028_v44 = vpack.c.bf16 %v964_v42, %v964_v42 }
 0x121   : > { %1077 = vst.msk [vmem:[%s1763_s26 + $0xbc] sm:$0xf] %vm1029_vm1, %v1012_v43 }
 0x122   : > { %1093 = vst.msk [vmem:[%s1763_s26 + $0xfc] sm:$0xf] %vm1029_vm1, %v1028_v44 }
 0x123   : > { %1533 = shalt.err (!%p1530_p5)
}
 0x124   : > { %s1586_s22 = smov 64   ;;  %s1587_s24 = smov 4  }
 0x125   : > { %1447 = dma.vmem_to_hbm [thread:$0]  (%p1653_p4), %s1109_s18, 4096, %s1111_s7, %s1095_s8, %s1586_s22, %s1586_s22, %s1587_s24  }
 0x126 PF: > { %p1453_p6 = scmp.ge.s32.totalorder %s1584_s20, 2  ;;  %s1125_s26 = sand.u32 1, %s1564_s15  }
 0x127   : > { %s1126_s29 = scalar_lea.sflag [#allocation3], %s1125_s26 }
 0x128   : > { %p1450_p7 = pnand %p1453_p6, %p1660_p8 }
 0x12a   : > { %p1451_p9 = pneg %p1450_p7 }
 0x12c   : > { %1559 = dma.done.wait (%p1451_p9), %s1126_s29, 4096  }
 0x12d   : > { %1561 = vsyncadd (%p1451_p9), %s1126_s29, 4294963200  ;;  %s17_s20 = sadd.s32 1, %s1584_s20   ;;  %s2061_s15 = smov %s1568_s16 }
 0x12e   : > { %p14_p10 = scmp.ge.s32.totalorder %s17_s20, 6   ;;  %s2062_s16 = smov %s1572_s17 }
 0x12f   : > { %s2063_s17 = smov %s1666_s28  ;;  %s2064_s18 = smov %s1580_s19 }
 0x130   : > { %s2065_s19 = smov %s2067_s23  ;;  %16 = sbr.rel (!%p14_p10) target bundleno = 4 (0x4), region = 80 }
 0x135   :  { %1132 = vsyncpa [#allocation3], 1 }
 0x136   :  { %1134 = vsyncpa [#allocation3 + $0x1], 1 }

</bundles_post_ra>
